<compile_context>
chip_gen: v7x
topology: tpu7x:2x2x1
jax: 0.10.0
libtpu: 0.0.40
codegen_flags: <defaults>
</compile_context>

<pallas_src>
import jax
import jax.numpy as jnp
from jax.experimental import pallas as pl
from jax.experimental.pallas import tpu as pltpu


# ---------------------------------------------------------------------------
# Fused Pallas kernel: 1x1 conv (+folded BN) + ReLU + global avg pool + fc.
# One grid step == one batch element.
# ---------------------------------------------------------------------------
def light_estimator_kernel(x_ref, wc_ref, bc_ref, wf_ref, bf_ref, o_ref):
    # x_ref : (H*W, Cin)  bf16  -- one batch element, channels on lanes
    # wc_ref: (Cin, Cout) bf16  -- 1x1 conv weight with BN scale folded in
    # bc_ref: (1, Cout)   f32   -- folded BN bias
    # wf_ref: (Cout, Cfc) f32   -- fc weight
    # bf_ref: (1, Cfc)    f32   -- fc bias
    # o_ref : (1, Cfc)    f32
    y = jnp.dot(x_ref[...], wc_ref[...],
                preferred_element_type=jnp.float32)          # (H*W, Cout) on MXU
    y = jnp.maximum(y + bc_ref[...], 0.0)                    # folded BN + ReLU
    pooled = jnp.mean(y, axis=0, keepdims=True)              # global avg pool (1, Cout)
    o_ref[...] = (jnp.dot(pooled, wf_ref[...],
                          preferred_element_type=jnp.float32)
                  + bf_ref[...])                              # fc -> (1, Cfc)


# ---------------------------------------------------------------------------
# Wrapper: single pallas_call, grid over batch.
# ---------------------------------------------------------------------------
def light_estimator(x_nchw, params):
    wc, bc, wf, bf = params
    N, Cin, H, W = x_nchw.shape
    Cout = wc.shape[-1]
    Cfc = wf.shape[-1]

    # NCHW -> (N, H*W, Cin): channels on the lane axis, pixels on sublanes.
    x = jnp.transpose(x_nchw, (0, 2, 3, 1)).reshape(N, H * W, Cin)
    x = x.astype(jnp.bfloat16)

    out = pl.pallas_call(
        light_estimator_kernel,
        out_shape=jax.ShapeDtypeStruct((N, 1, Cfc), jnp.float32),
        grid=(N,),
        in_specs=[
            pl.BlockSpec((None, H * W, Cin), lambda n: (n, 0, 0)),  # activations
            pl.BlockSpec((Cin, Cout), lambda n: (0, 0)),            # conv weight
            pl.BlockSpec((1, Cout), lambda n: (0, 0)),              # folded BN bias
            pl.BlockSpec((Cout, Cfc), lambda n: (0, 0)),            # fc weight
            pl.BlockSpec((1, Cfc), lambda n: (0, 0)),               # fc bias
        ],
        out_specs=pl.BlockSpec((None, 1, Cfc), lambda n: (n, 0, 0)),
        compiler_params=pltpu.CompilerParams(
            dimension_semantics=("parallel",),      # v7x: one batch elem per TC
            vmem_limit_bytes=32 * 1024 * 1024),
    )(x, wc, bc, wf, bf)

    return out.reshape(N, Cfc)


# ---------------------------------------------------------------------------
# Deterministic parameter construction + eval-mode BN folding.
# ---------------------------------------------------------------------------
def make_params(key, cin=384, cout=128, cfc=27):
    eps = 1e-5
    k = jax.random.split(key, 8)
    w_conv = 0.05 * jax.random.normal(k[0], (cin, cout), jnp.float32)   # 1x1 conv
    b_conv = 0.01 * jax.random.normal(k[1], (cout,), jnp.float32)
    gamma = 1.0 + 0.1 * jax.random.normal(k[2], (cout,), jnp.float32)
    beta = 0.05 * jax.random.normal(k[3], (cout,), jnp.float32)
    r_mean = 0.02 * jax.random.normal(k[4], (cout,), jnp.float32)
    r_var = 0.9 + jnp.abs(0.1 * jax.random.normal(k[5], (cout,), jnp.float32))
    w_fc = 0.1 * jax.random.normal(k[6], (cout, cfc), jnp.float32)
    b_fc = 0.01 * jax.random.normal(k[7], (cfc,), jnp.float32)

    # Fold eval-mode BN:  relu(s*(x@W + b_conv - mean) + beta)
    #                   = relu(x @ (W*s) + (beta + s*(b_conv - mean)))
    s = gamma / jnp.sqrt(r_var + eps)
    wc = (w_conv * s[None, :]).astype(jnp.bfloat16)           # scale folded into W
    bc = (beta + s * (b_conv - r_mean)).reshape(1, cout).astype(jnp.float32)
    wf = w_fc.astype(jnp.float32)
    bf = b_fc.reshape(1, cfc).astype(jnp.float32)
    return wc, bc, wf, bf


# ---------------------------------------------------------------------------
if __name__ == "__main__":
    key = jax.random.PRNGKey(0)
    key, kx = jax.random.split(key)

    # Small shapes consistent with the module: Conv2d(384->128), fc(128->27).
    N, C, H, W = 2, 384, 16, 16
    x = jax.random.normal(kx, (N, C, H, W), jnp.float32)

    params = make_params(key)
    fn = jax.jit(light_estimator)
    out = jax.block_until_ready(fn(x, params))

    assert out.shape == (N, 27), out.shape
    assert out.dtype == jnp.float32
    assert bool(jnp.all(jnp.isfinite(out)))
    print("KERNEL_OK")
</pallas_src>

<mosaic_0001>
module attributes {stable_mosaic.version = 11 : i64} {
  func.func @light_estimator_kernel(%arg0: i32, %arg1: memref<1x256x384xbf16, #tpu.memory_space<vmem>>, %arg2: memref<384x128xbf16, #tpu.memory_space<vmem>>, %arg3: memref<1x128xf32, #tpu.memory_space<vmem>>, %arg4: memref<128x27xf32, #tpu.memory_space<vmem>>, %arg5: memref<1x27xf32, #tpu.memory_space<vmem>>, %arg6: memref<1x1x27xf32, #tpu.memory_space<vmem>>) attributes {dimension_semantics = [#tpu.dimension_semantics<parallel>], iteration_bounds = array<i64: 2>, scalar_prefetch = 0 : i64, scratch_operands = 0 : i64, tpu.core_type = #tpu.core_type<tc>, window_params = [{transform_indices = @transform_0, window_bounds = array<i64: 1, 256, 384>}, {pipeline_mode = #tpu.pipeline_mode<synchronous>, transform_indices = @transform_1, window_bounds = array<i64: 384, 128>}, {pipeline_mode = #tpu.pipeline_mode<synchronous>, transform_indices = @transform_2, window_bounds = array<i64: 1, 128>}, {pipeline_mode = #tpu.pipeline_mode<synchronous>, transform_indices = @transform_3, window_bounds = array<i64: 128, 27>}, {pipeline_mode = #tpu.pipeline_mode<synchronous>, transform_indices = @transform_4, window_bounds = array<i64: 1, 27>}, {transform_indices = @transform_5, window_bounds = array<i64: 1, 1, 27>}]} {
    %c0 = arith.constant 0 : index
    %c0_0 = arith.constant 0 : index
    %c0_1 = arith.constant 0 : index
    %0 = vector.load %arg1[%c0, %c0_0, %c0_1] : memref<1x256x384xbf16, #tpu.memory_space<vmem>>, vector<1x256x384xbf16>
    %1 = vector.shape_cast %0 : vector<1x256x384xbf16> to vector<256x384xbf16>
    %c0_2 = arith.constant 0 : index
    %c0_3 = arith.constant 0 : index
    %2 = vector.load %arg2[%c0_2, %c0_3] : memref<384x128xbf16, #tpu.memory_space<vmem>>, vector<384x128xbf16>
    %cst = arith.constant dense<0.000000e+00> : vector<256x128xf32>
    %3 = tpu.matmul %1, %2, %cst {dimension_numbers = #tpu.dot_dimension_numbers<[1], [0], [0], [1], [0, 0, 1, 1], [], []>} : vector<256x384xbf16>, vector<384x128xbf16>, vector<256x128xf32> -> vector<256x128xf32>
    %c0_4 = arith.constant 0 : index
    %c0_5 = arith.constant 0 : index
    %4 = vector.load %arg3[%c0_4, %c0_5] : memref<1x128xf32, #tpu.memory_space<vmem>>, vector<1x128xf32>
    %5 = vector.broadcast %4 : vector<1x128xf32> to vector<256x128xf32>
    %6 = arith.addf %3, %5 : vector<256x128xf32>
    %cst_6 = arith.constant 0.000000e+00 : f32
    %7 = vector.broadcast %cst_6 : f32 to vector<256x128xf32>
    %8 = arith.maximumf %6, %7 : vector<256x128xf32>
    %cst_7 = arith.constant dense<0.000000e+00> : vector<128xf32>
    %9 = vector.multi_reduction <add>, %8, %cst_7 [0] : vector<256x128xf32> to vector<128xf32>
    %10 = vector.shape_cast %9 : vector<128xf32> to vector<1x128xf32>
    %cst_8 = arith.constant 2.560000e+02 : f32
    %11 = vector.broadcast %cst_8 : f32 to vector<1x128xf32>
    %12 = arith.divf %10, %11 : vector<1x128xf32>
    %c0_9 = arith.constant 0 : index
    %c0_10 = arith.constant 0 : index
    %13 = vector.load %arg4[%c0_9, %c0_10] : memref<128x27xf32, #tpu.memory_space<vmem>>, vector<128x27xf32>
    %cst_11 = arith.constant dense<0.000000e+00> : vector<1x27xf32>
    %14 = tpu.matmul %12, %13, %cst_11 {dimension_numbers = #tpu.dot_dimension_numbers<[1], [0], [0], [1], [0, 0, 1, 1], [], []>} : vector<1x128xf32>, vector<128x27xf32>, vector<1x27xf32> -> vector<1x27xf32>
    %c0_12 = arith.constant 0 : index
    %c0_13 = arith.constant 0 : index
    %15 = vector.load %arg5[%c0_12, %c0_13] : memref<1x27xf32, #tpu.memory_space<vmem>>, vector<1x27xf32>
    %16 = arith.addf %14, %15 : vector<1x27xf32>
    %c0_14 = arith.constant 0 : index
    %c0_15 = arith.constant 0 : index
    %c0_16 = arith.constant 0 : index
    %17 = vector.load %arg6[%c0_14, %c0_15, %c0_16] : memref<1x1x27xf32, #tpu.memory_space<vmem>>, vector<1x1x27xf32>
    %18 = vector.shape_cast %17 : vector<1x1x27xf32> to vector<1x27xf32>
    %19 = vector.shape_cast %16 : vector<1x27xf32> to vector<1x1x27xf32>
    tpu.vector_store %arg6[%c0_14, %c0_15, %c0_16], %19 {strides = array<i32>} : memref<1x1x27xf32, #tpu.memory_space<vmem>>, vector<1x1x27xf32>,
    return
  }
  func.func @transform_0(%arg0: i32) -> (i32, i32, i32) {
    %c0_i32 = arith.constant 0 : i32
    %c0_i32_0 = arith.constant 0 : i32
    %c0_i32_1 = arith.constant 0 : i32
    return %arg0, %c0_i32, %c0_i32_0 : i32, i32, i32
  }
  func.func @transform_1(%arg0: i32) -> (i32, i32) {
    %c0_i32 = arith.constant 0 : i32
    %c0_i32_0 = arith.constant 0 : i32
    %c0_i32_1 = arith.constant 0 : i32
    return %c0_i32, %c0_i32_0 : i32, i32
  }
  func.func @transform_2(%arg0: i32) -> (i32, i32) {
    %c0_i32 = arith.constant 0 : i32
    %c0_i32_0 = arith.constant 0 : i32
    %c0_i32_1 = arith.constant 0 : i32
    return %c0_i32, %c0_i32_0 : i32, i32
  }
  func.func @transform_3(%arg0: i32) -> (i32, i32) {
    %c0_i32 = arith.constant 0 : i32
    %c0_i32_0 = arith.constant 0 : i32
    %c0_i32_1 = arith.constant 0 : i32
    return %c0_i32, %c0_i32_0 : i32, i32
  }
  func.func @transform_4(%arg0: i32) -> (i32, i32) {
    %c0_i32 = arith.constant 0 : i32
    %c0_i32_0 = arith.constant 0 : i32
    %c0_i32_1 = arith.constant 0 : i32
    return %c0_i32, %c0_i32_0 : i32, i32
  }
  func.func @transform_5(%arg0: i32) -> (i32, i32, i32) {
    %c0_i32 = arith.constant 0 : i32
    %c0_i32_0 = arith.constant 0 : i32
    %c0_i32_1 = arith.constant 0 : i32
    return %arg0, %c0_i32, %c0_i32_0 : i32, i32, i32
  }
}

</mosaic_0001>

<bundles_post_ra>
// kernel: light_estimator.1
= control target key start
LH: loop header
LB: loop body
LE: loop exit
PB: predicated region body
PF: predicated region fallthrough
CT: control target
= control target key end

     0   :  { %10 = vsyncpa [#allocation3], 0  ;;  %s2234_s0 = inlined_call_operand.vmem [shape: bf16[2,256,384], index: 0, kind: input, shape index: {}]   ;;  %s2235_s1 = inlined_call_operand.vmem [shape: bf16[384,128], index: 1, kind: input, shape index: {}]   ;;  %s2236_s2 = inlined_call_operand.vmem [shape: f32[1,128], index: 2, kind: input, shape index: {}]   ;;  %s2237_s3 = inlined_call_operand.vmem [shape: f32[128,27], index: 3, kind: input, shape index: {}]   ;;  %s2238_s4 = inlined_call_operand.vmem [shape: f32[1,27], index: 4, kind: input, shape index: {}]   ;;  %s2239_s5 = inlined_call_operand.hbm [shape: f32[2,1,27], index: 5, kind: output, shape index: {}]  }
   0x1   :  { %12 = vsyncpa [#allocation3 + $0x1], 0  ;;  %s1862_s18 = smov 0   ;;  %s1864_s19 = smov 0  }
   0x2   :  { %s1866_s20 = smov 0   ;;  %s1868_s21 = smov 0  }
   0x3 LB: > { %s1883_s22 = sadd.s32 4294967295, %s1826_s21   ;;  %s1292_s23 = sadd.s32 4294967294, %s1826_s21   ;;  %s1826_s21 = sphi %s1868_s21, %s2245_s21   ;;  %s1822_s20 = sphi %s1866_s20, %s2244_s20   ;;  %s1818_s19 = sphi %s1864_s19, %s2243_s19   ;;  %s1814_s18 = sphi %s1862_s18, %s2242_s18  }
   0x4   : > { %s1887_s24 = sadd.s32 1, %s1826_s21   ;;  %s135_s25 = sadd.s32 1, %s1822_s20 }
   0x5   : > { %s132_s26 = ssub.s32 %s1826_s21, %s1887_s24  ;;  %p145_p0 = scmp.ne.s32.totalorder %s1822_s20, %s1818_s19 }
   0x6   : > { %p133_p1 = scmp.eq.s32.totalorder %s132_s26, 0  ;;  %p146_p2 = scmp.eq.s32.totalorder %s1883_s22, 1 }
   0x7   : > { %p151_p3 = scmp.ne.s32.totalorder %s1818_s19, %s1814_s18  ;;  %p152_p4 = scmp.eq.s32.totalorder %s1292_s23, 1 }
   0x8   : > { %s1898_s27 = scalar_select %p133_p1, %s1822_s20, %s135_s25  }
   0x9   : > { %p1900_p5 = por %p146_p2, %p145_p0  ;;  %p1904_p6 = por %p152_p4, %p151_p3 }
   0xa   : > { %p1295_p7 = scmp.ge.s32.totalorder %s1826_s21, 1  ;;  %p190_p8 = scmp.lt.s32.totalorder %s1826_s21, 3 }
   0xc   : > { %p191_p9 = pnand %p1295_p7, %p190_p8 }
   0xd   : > { %v1676_v0 = vld [vmem:[%s2235_s1 + $0x40] sm:$0xff] (!%p191_p9)   ;;  %v1678_v2 = vld [vmem:[%s2235_s1 + $0x48] sm:$0xff] (!%p191_p9)   ;;  %v1681_v5 = vld [vmem:[%s2235_s1 + $0x50] sm:$0xff] (!%p191_p9)   ;;  %p217_p10 = scmp.lt.s32.totalorder (!%p191_p9), %s1883_s22, 1  ;;  %vm1829_vm0 = vmmov (!%p191_p9), 0   ;;  %s215_s12 = sand.u32 (!%p191_p9), 1, %s1818_s19  }
   0xe   : > { %194 = sbr.rel (%p191_p9) target bundleno = 633 (0x279), region = 40  ;;  %v1677_v1 = vld [vmem:[%s2235_s1] sm:$0xff] (!%p191_p9)   ;;  %1373 = vmatprep.subr.bf16.mxu0 (!%p191_p9), %v1676_v0  ;;  %v1680_v4 = vld [vmem:[%s2235_s1 + $0x8] sm:$0xff] (!%p191_p9)   ;;  %v1683_v7 = vld [vmem:[%s2235_s1 + $0x10] sm:$0xff] (!%p191_p9)   ;;  %s216_s16 = scalar_lea.vmem (!%p191_p9), [#allocation2], %s215_s12  ;;  %vm1222_vm1 = vcmask (!%p191_p9), 212992  }
   0xf   : > { %1374 = vmatpush3.bf16.msra.mxu0 (!%p191_p9), %v1677_v1  ;;  %v1679_v3 = vld [vmem:[%s2235_s1 + $0x80] sm:$0xff] (!%p191_p9)   ;;  %v1682_v6 = vld [vmem:[%s2235_s1 + $0x88] sm:$0xff] (!%p191_p9)   ;;  %v1684_v8 = vld [vmem:[%s2235_s1 + $0x58] sm:$0xff] (!%p191_p9)   ;;  %s1225_s30 = scalar_lea.sflag (!%p191_p9), [#allocation3], %s215_s12 }
  0x10   : > { %1375 = vmatprep.subr.bf16.mxu0 (!%p191_p9), %v1678_v2  ;;  %1526 = vmatprep.subr.bf16.mxu1 (!%p191_p9), %v1679_v3  ;;  %v1685_v9 = vld [vmem:[%s2235_s1 + $0x90] sm:$0xff] (!%p191_p9)   ;;  %v1686_v10 = vld [vmem:[%s2235_s1 + $0x18] sm:$0xff] (!%p191_p9)   ;;  %v1687_v11 = vld [vmem:[%s2235_s1 + $0x60] sm:$0xff] (!%p191_p9)  }
  0x11   : > { %1527 = vmatpush3.bf16.msra.mxu1 (!%p191_p9), %v1679_v3  ;;  %v1688_v12 = vld [vmem:[%s2235_s1 + $0x98] sm:$0xff] (!%p191_p9)   ;;  %v1689_v13 = vld [vmem:[%s2235_s1 + $0x20] sm:$0xff] (!%p191_p9)   ;;  %v1690_v15 = vld [vmem:[%s2235_s1 + $0x68] sm:$0xff] (!%p191_p9)  }
  0x12   : > { %1528 = vmatprep.subr.bf16.mxu1 (!%p191_p9), %v1682_v6  ;;  %v1691_v14 = vld [vmem:[%s2235_s1 + $0xa0] sm:$0xff] (!%p191_p9)   ;;  %v1692_v16 = vld [vmem:[%s2235_s1 + $0x28] sm:$0xff] (!%p191_p9)   ;;  %v1693_v18 = vld [vmem:[%s2235_s1 + $0x70] sm:$0xff] (!%p191_p9)  }
  0x13   : > { %1376 = vmatpush3.bf16.msra.mxu0 (!%p191_p9), %v1680_v4  ;;  %v1694_v17 = vld [vmem:[%s2235_s1 + $0xa8] sm:$0xff] (!%p191_p9)   ;;  %v1695_v19 = vld [vmem:[%s2235_s1 + $0x30] sm:$0xff] (!%p191_p9)   ;;  %v1696_v20 = vld [vmem:[%s2235_s1 + $0x78] sm:$0xff] (!%p191_p9)  }
  0x14   : > { %1377 = vmatprep.subr.bf16.mxu0 (!%p191_p9), %v1681_v5  ;;  %v1697_v21 = vld [vmem:[%s2235_s1 + $0xb0] sm:$0xff] (!%p191_p9)   ;;  %v1698_v23 = vld [vmem:[%s2235_s1 + $0x38] sm:$0xff] (!%p191_p9)  }
  0x15   : > { %1529 = vmatpush3.bf16.msra.mxu1 %v1682_v6  ;;  %s218_s15 = scalar_select %p217_p10, %s1883_s22, 1  ;;  %v1702_v25 = vld [vmem:[%s2235_s1 + $0xb8] sm:$0xff]  }
  0x16   : > { %1530 = vmatprep.subr.bf16.mxu1 %v1685_v9 }
  0x17   : > { %1378 = vmatpush3.bf16.msra.mxu0 %v1683_v7  ;;  %s1633_s6 = smul.u32 384, %s218_s15  ;;  %s1370_s15 = sshll.u32 %s1883_s22, 4 }
  0x18   : > { %1379 = vmatprep.subr.bf16.mxu0 %v1684_v8  ;;  %v1135_v8 = vld [vmem:[%s2237_s3] sm:$0xff]  ;;  %s2192_s26 = scalar_lea.hbm %s2239_s5, %s1370_s15  ;;  %s1831_s22 = smov [#allocation2]  }
  0x19   : > { %1531 = vmatpush3.bf16.msra.mxu1 %v1685_v9  ;;  %s1975_s17 = scalar_lea.vmem %s2234_s0, %s1633_s6  ;;  %v1136_v9 = vld [vmem:[%s2237_s3 + $0x8] sm:$0xff]  ;;  %s1768_s7 = sshll.u32 %s1831_s22, 4  ;;  %s1769_s7 = int_to_ptr.vmem [resolvable:$false] %s1768_s7 }
  0x1a   : > { %1532 = vmatprep.subr.bf16.mxu1 %v1688_v12  ;;  %v1701_v22 = vld [vmem:[%s1975_s17 + $0x4] ss:$12 sps:$4 sm:$0xff]   ;;  %v1703_v24 = vld [vmem:[%s1975_s17 + $0x8] ss:$12 sps:$4 sm:$0xff]   ;;  %v1699_v26 = vld [vmem:[%s1975_s17] ss:$12 sps:$4 sm:$0xff]  }
  0x1b   : > { %1380 = vmatpush3.bf16.msra.mxu0 %v1686_v10  ;;  %774 = vmatprep.mubr.bf16.mxu0 %v1701_v22  ;;  %v1705_v27 = vld [vmem:[%s1975_s17 + $0x1c] ss:$12 sps:$4 sm:$0xff]   ;;  %v1704_v28 = vld [vmem:[%s1975_s17 + $0x20] ss:$12 sps:$4 sm:$0xff]   ;;  %v1711_v29 = vld [vmem:[%s1975_s17 + $0x38] ss:$12 sps:$4 sm:$0xff]  }
  0x1c   : > { %1381 = vmatprep.subr.bf16.mxu0 %v1687_v11  ;;  %1542 = vmatprep.mubr.bf16.mxu1 %v1703_v24  ;;  %v1707_v30 = vld [vmem:[%s1975_s17 + $0x18] ss:$12 sps:$4 sm:$0xff]   ;;  %v1708_v31 = vld [vmem:[%s1975_s17 + $0x34] ss:$12 sps:$4 sm:$0xff]   ;;  %v1712_v32 = vld [vmem:[%s1975_s17 + $0x50] ss:$12 sps:$4 sm:$0xff]   ;;  %v1610_v11 = vpack.c.bf16 %v1136_v9, %v1135_v8 }
  0x1d   : > { %1533 = vmatpush3.bf16.msra.mxu1 %v1688_v12  ;;  %v1719_v33 = vld [vmem:[%s1975_s17 + $0x68] ss:$12 sps:$4 sm:$0xff]   ;;  %v1710_v34 = vld [vmem:[%s1975_s17 + $0x30] ss:$12 sps:$4 sm:$0xff]   ;;  %v1713_v35 = vld [vmem:[%s1975_s17 + $0x4c] ss:$12 sps:$4 sm:$0xff]  }
  0x1e   : > { %1534 = vmatprep.subr.bf16.mxu1 %v1691_v14  ;;  %v1720_v36 = vld [vmem:[%s1975_s17 + $0x80] ss:$12 sps:$4 sm:$0xff]   ;;  %v1727_v37 = vld [vmem:[%s1975_s17 + $0x98] ss:$12 sps:$4 sm:$0xff]   ;;  %v1715_v38 = vld [vmem:[%s1975_s17 + $0x48] ss:$12 sps:$4 sm:$0xff]  }
  0x1f   : > { %1382 = vmatpush3.bf16.msra.mxu0 %v1689_v13  ;;  %v1716_v39 = vld [vmem:[%s1975_s17 + $0x64] ss:$12 sps:$4 sm:$0xff]   ;;  %v1735_v41 = vld [vmem:[%s1975_s17 + $0xc8] ss:$12 sps:$4 sm:$0xff]   ;;  %v1718_v42 = vld [vmem:[%s1975_s17 + $0x60] ss:$12 sps:$4 sm:$0xff]  }
  0x20   : > { %1383 = vmatprep.subr.bf16.mxu0 %v1690_v15  ;;  %v1728_v40 = vld [vmem:[%s1975_s17 + $0xb0] ss:$12 sps:$4 sm:$0xff]   ;;  %v1736_v44 = vld [vmem:[%s1975_s17 + $0xe0] ss:$12 sps:$4 sm:$0xff]   ;;  %v1743_v45 = vld [vmem:[%s1975_s17 + $0xf8] ss:$12 sps:$4 sm:$0xff]  }
  0x21   : > { %1535 = vmatpush3.bf16.msra.mxu1 %v1691_v14  ;;  %v1721_v43 = vld [vmem:[%s1975_s17 + $0x7c] ss:$12 sps:$4 sm:$0xff]   ;;  %v1723_v46 = vld [vmem:[%s1975_s17 + $0x78] ss:$12 sps:$4 sm:$0xff]   ;;  %v1724_v47 = vld [vmem:[%s1975_s17 + $0x94] ss:$12 sps:$4 sm:$0xff]  }
  0x22   : > { %1536 = vmatprep.subr.bf16.mxu1 %v1694_v17  ;;  %v1744_v48 = vld [vmem:[%s1975_s17 + $0x110] ss:$12 sps:$4 sm:$0xff]   ;;  %v1751_v49 = vld [vmem:[%s1975_s17 + $0x128] ss:$12 sps:$4 sm:$0xff]   ;;  %v1729_v51 = vld [vmem:[%s1975_s17 + $0xac] ss:$12 sps:$4 sm:$0xff]  }
  0x23   : > { %1384 = vmatpush3.bf16.msra.mxu0 %v1692_v16  ;;  %v1726_v50 = vld [vmem:[%s1975_s17 + $0x90] ss:$12 sps:$4 sm:$0xff]   ;;  %v1752_v52 = vld [vmem:[%s1975_s17 + $0x140] ss:$12 sps:$4 sm:$0xff]   ;;  %v1759_v53 = vld [vmem:[%s1975_s17 + $0x158] ss:$12 sps:$4 sm:$0xff]  }
  0x24   : > { %1385 = vmatprep.subr.bf16.mxu0 %v1693_v18  ;;  %v1731_v54 = vld [vmem:[%s1975_s17 + $0xa8] ss:$12 sps:$4 sm:$0xff]   ;;  %v1732_v55 = vld [vmem:[%s1975_s17 + $0xc4] ss:$12 sps:$4 sm:$0xff]   ;;  %v1734_v57 = vld [vmem:[%s1975_s17 + $0xc0] ss:$12 sps:$4 sm:$0xff]  }
  0x25   : > { %1537 = vmatpush3.bf16.msra.mxu1 %v1694_v17  ;;  %v1760_v56 = vld [vmem:[%s1975_s17 + $0x170] ss:$12 sps:$4 sm:$0xff]   ;;  %v1739_v59 = vld [vmem:[%s1975_s17 + $0xd8] ss:$12 sps:$4 sm:$0xff]   ;;  %v1740_v60 = vld [vmem:[%s1975_s17 + $0xf4] ss:$12 sps:$4 sm:$0xff]  }
  0x26   : > { %1538 = vmatprep.subr.bf16.mxu1 %v1697_v21  ;;  %v1737_v58 = vld [vmem:[%s1975_s17 + $0xdc] ss:$12 sps:$4 sm:$0xff]   ;;  %v1745_v62 = vld [vmem:[%s1975_s17 + $0x10c] ss:$12 sps:$4 sm:$0xff]   ;;  %v1748_v0 = vld [vmem:[%s1975_s17 + $0x124] ss:$12 sps:$4 sm:$0xff]  }
  0x27   : > { %1386 = vmatpush3.bf16.msra.mxu0 %v1695_v19  ;;  %v1742_v61 = vld [vmem:[%s1975_s17 + $0xf0] ss:$12 sps:$4 sm:$0xff]   ;;  %v1747_v63 = vld [vmem:[%s1975_s17 + $0x108] ss:$12 sps:$4 sm:$0xff]   ;;  %v1750_v1 = vld [vmem:[%s1975_s17 + $0x120] ss:$12 sps:$4 sm:$0xff]  }
  0x28   : > { %1387 = vmatprep.subr.bf16.mxu0 %v1696_v20  ;;  %v1753_v2 = vld [vmem:[%s1975_s17 + $0x13c] ss:$12 sps:$4 sm:$0xff]   ;;  %v1755_v3 = vld [vmem:[%s1975_s17 + $0x138] ss:$12 sps:$4 sm:$0xff]   ;;  %v1756_v4 = vld [vmem:[%s1975_s17 + $0x154] ss:$12 sps:$4 sm:$0xff]  }
  0x29   : > { %1539 = vmatpush3.bf16.msra.mxu1 %v1697_v21  ;;  %v1758_v5 = vld [vmem:[%s1975_s17 + $0x150] ss:$12 sps:$4 sm:$0xff]   ;;  %v1761_v6 = vld [vmem:[%s1975_s17 + $0x16c] ss:$12 sps:$4 sm:$0xff]   ;;  %v1763_v7 = vld [vmem:[%s1975_s17 + $0x168] ss:$12 sps:$4 sm:$0xff]  }
  0x2a   : > { %1540 = vmatprep.subr.bf16.mxu1 %v1702_v25  ;;  %v1828_v10 = vmov 0.0|0.0   ;;  %v1137_v12 = vld [vmem:[%s2237_s3 + $0x10] sm:$0xff]  ;;  %v1138_v13 = vld [vmem:[%s2237_s3 + $0x18] sm:$0xff]  ;;  %v1139_v15 = vld [vmem:[%s2237_s3 + $0x20] sm:$0xff]  ;;  %s1237_s17 = sshll.u32 %s216_s16, 4  ;;  %s1770_s8 = scalar_lea.vmem %s1769_s7, 32  ;;  %s2194_s17 = int_to_ptr.vmem [resolvable:$true] %s1237_s17 }
  0x2b   : > { %1388 = vmatpush3.bf16.msra.mxu0 %v1698_v23  ;;  %v1613_v14 = vpack.c.bf16 %v1138_v13, %v1137_v12  ;;  %v1140_v16 = vld [vmem:[%s2237_s3 + $0x28] sm:$0xff]  ;;  %v1141_v18 = vld [vmem:[%s2237_s3 + $0x30] sm:$0xff]  ;;  %v1142_v19 = vld [vmem:[%s2237_s3 + $0x38] sm:$0xff]  ;;  %s1764_s6 = scalar_lea.vmem %s2194_s17, 16  ;;  %p1771_p0 = scmp.lt.s32.totalorder %s2194_s17, %s1769_s7 }
  0x2c   : > { %v1616_v17 = vpack.c.bf16 %v1140_v16, %v1139_v15  ;;  %v1619_v20 = vpack.c.bf16 %v1142_v19, %v1141_v18  ;;  %v1143_v21 = vld [vmem:[%s2237_s3 + $0x40] sm:$0xff]  ;;  %v1144_v22 = vld [vmem:[%s2237_s3 + $0x48] sm:$0xff]  ;;  %p1765_p11 = scmp.ne.s32.totalorder %s2194_s17, %s1764_s6  ;;  %p1772_p1 = scmp.lt.s32.totalorder %s1770_s8, %s1764_s6 }
  0x2d   : > { %1541 = vmatpush3.bf16.msra.mxu1 %v1702_v25  ;;  %v1622_v23 = vpack.c.bf16 %v1144_v22, %v1143_v21 }
  0x2e   : > { %775 = vmatmul.mubr.bf16.vlgmr.msra.gmra.mrb[0].mxu0 %v1699_v26  ;;  %1609 = vmatprep.subr.bf16.mxu1 %v1828_v10  ;;  %v2076_v26 = vld [vmem:[%s2236_s2] ss:$0 sm:$0xff]  ;;  %p1766_p12 = pnand %p1765_p11, %p1900_p5  ;;  %p1773_p2 = por %p1772_p1, %p1771_p0 }
  0x2f   : > { %782 = vmatprep.mubr.bf16.mxu0 %v1705_v27 }
  0x30   : > { %1543 = vmatmul.mubr.bf16.vlgmr.msra.gmra.mrb[0].mxu1 %v1704_v28  ;;  %p1767_p13 = pneg %p1766_p12 }
  0x31   : > { %1546 = vmatprep.mubr.bf16.mxu1 %v1711_v29  ;;  %1611 = vmatpush3.bf16.msra.mxu1 %v1610_v11 }
  0x32   : > { %1612 = vmatprep.subr.bf16.mxu1 %v1828_v10  ;;  %p1774_p3 = pnand %p1773_p2, %p1767_p13 }
  0x35   : > { %1614 = vmatpush3.bf16.msra.mxu1 %v1613_v14 }
  0x36   : > { %783 = vmatmul.mubr.bf16.gmra.mrb[4].mxu0 %v1707_v30  ;;  %1615 = vmatprep.subr.bf16.mxu1 %v1828_v10 }
  0x37   : > { %790 = vmatprep.mubr.bf16.mxu0 %v1708_v31 }
  0x38   : > { %1547 = vmatmul.mubr.bf16.gmra.mrb[4].mxu1 %v1712_v32 }
  0x39   : > { %1550 = vmatprep.mubr.bf16.mxu1 %v1719_v33  ;;  %1617 = vmatpush3.bf16.msra.mxu1 %v1616_v17 }
  0x3a   : > { %1618 = vmatprep.subr.bf16.mxu1 %v1828_v10 }
  0x3d   : > { %1620 = vmatpush3.bf16.msra.mxu1 %v1619_v20 }
  0x3e   : > { %791 = vmatmul.mubr.bf16.gmra.mrb[8].mxu0 %v1710_v34  ;;  %1621 = vmatprep.subr.bf16.mxu1 %v1828_v10 }
  0x3f   : > { %798 = vmatprep.mubr.bf16.mxu0 %v1713_v35 }
  0x40   : > { %1551 = vmatmul.mubr.bf16.gmra.mrb[8].mxu1 %v1720_v36 }
  0x41   : > { %1554 = vmatprep.mubr.bf16.mxu1 %v1727_v37  ;;  %1623 = vmatpush3.bf16.msra.mxu1 %v1622_v23 }
  0x42   : > { %1624 = vmatprep.subr.bf16.mxu1 %v1828_v10 }
  0x46   : > { %799 = vmatmul.mubr.bf16.gmra.mrb[12].mxu0 %v1715_v38  ;;  %v1145_v38 = vld [vmem:[%s2237_s3 + $0x50] sm:$0xff] }
  0x47   : > { %806 = vmatprep.mubr.bf16.mxu0 %v1716_v39  ;;  %v1146_v39 = vld [vmem:[%s2237_s3 + $0x58] sm:$0xff] }
  0x48   : > { %1555 = vmatmul.mubr.bf16.gmra.mrb[12].mxu1 %v1728_v40  ;;  %v1625_v40 = vpack.c.bf16 %v1146_v39, %v1145_v38 }
  0x49   : > { %1558 = vmatprep.mubr.bf16.mxu1 %v1735_v41 }
  0x4a   : > { %1626 = vmatpush3.bf16.msra.mxu1 %v1625_v40 }
  0x4b   : > { %1627 = vmatprep.subr.bf16.mxu1 %v1828_v10 }
  0x4e   : > { %807 = vmatmul.mubr.bf16.gmra.mrb[16].mxu0 %v1718_v42 }
  0x4f   : > { %814 = vmatprep.mubr.bf16.mxu0 %v1721_v43 }
  0x50   : > { %1559 = vmatmul.mubr.bf16.gmra.mrb[16].mxu1 %v1736_v44 }
  0x51   : > { %1562 = vmatprep.mubr.bf16.mxu1 %v1743_v45 }
  0x56   : > { %815 = vmatmul.mubr.bf16.gmra.mrb[20].mxu0 %v1723_v46 }
  0x57   : > { %822 = vmatprep.mubr.bf16.mxu0 %v1724_v47 }
  0x58   : > { %1563 = vmatmul.mubr.bf16.gmra.mrb[20].mxu1 %v1744_v48  ;;  %v1147_v48 = vld [vmem:[%s2237_s3 + $0x60] sm:$0xff] }
  0x59   : > { %1566 = vmatprep.mubr.bf16.mxu1 %v1751_v49  ;;  %v1148_v49 = vld [vmem:[%s2237_s3 + $0x68] sm:$0xff] }
  0x5e   : > { %823 = vmatmul.mubr.bf16.gmra.mrb[24].mxu0 %v1726_v50 }
  0x5f   : > { %830 = vmatprep.mubr.bf16.mxu0 %v1729_v51 }
  0x60   : > { %1567 = vmatmul.mubr.bf16.gmra.mrb[24].mxu1 %v1752_v52  ;;  %v1628_v52 = vpack.c.bf16 %v1148_v49, %v1147_v48 }
  0x61   : > { %1570 = vmatprep.mubr.bf16.mxu1 %v1759_v53 }
  0x62   : > { %1629 = vmatpush3.bf16.msra.mxu1 %v1628_v52 }
  0x63   : > { %1630 = vmatprep.subr.bf16.mxu1 %v1828_v10 }
  0x66   : > { %831 = vmatmul.mubr.bf16.gmra.mrb[28].mxu0 %v1731_v54 }
  0x67   : > { %838 = vmatprep.mubr.bf16.mxu0 %v1732_v55 }
  0x68   : > { %1571 = vmatmul.mubr.bf16.gmra.mrb[28].mxu1 %v1760_v56 }
  0x6e   : > { %839 = vmatmul.mubr.bf16.gmra.mrb[32].mxu0 %v1734_v57 }
  0x6f   : > { %846 = vmatprep.mubr.bf16.mxu0 %v1737_v58 }
  0x76   : > { %847 = vmatmul.mubr.bf16.gmra.mrb[36].mxu0 %v1739_v59 }
  0x77   : > { %854 = vmatprep.mubr.bf16.mxu0 %v1740_v60 }
  0x7e   : > { %855 = vmatmul.mubr.bf16.gmra.mrb[40].mxu0 %v1742_v61  ;;  %v1149_v61 = vld [vmem:[%s2237_s3 + $0x70] sm:$0xff] }
  0x7f   : > { %862 = vmatprep.mubr.bf16.mxu0 %v1745_v62  ;;  %v1150_v62 = vld [vmem:[%s2237_s3 + $0x78] sm:$0xff] }
  0x86   : > { %863 = vmatmul.mubr.bf16.gmra.mrb[44].mxu0 %v1747_v63  ;;  %v1631_v63 = vpack.c.bf16 %v1150_v62, %v1149_v61 }
  0x87   : > { %870 = vmatprep.mubr.bf16.mxu0 %v1748_v0  ;;  %v1830_v0 = vmov 0.0  }
  0x88   : > { %1606 = vmatprep.mubr.msk.f32.mxu1 %vm1829_vm0, %v1830_v0  ;;  %1632 = vmatpush3.bf16.msra.mxu1 %v1631_v63 }
  0x8e   : > { %871 = vmatmul.mubr.bf16.gmra.mrb[48].mxu0 %v1750_v1 }
  0x8f   : > { %878 = vmatprep.mubr.bf16.mxu0 %v1753_v2 }
  0x96   : > { %879 = vmatmul.mubr.bf16.gmra.mrb[52].mxu0 %v1755_v3 }
  0x97   : > { %886 = vmatprep.mubr.bf16.mxu0 %v1756_v4 }
  0x9e   : > { %887 = vmatmul.mubr.bf16.gmra.mrb[56].mxu0 %v1758_v5 }
  0x9f   : > { %894 = vmatprep.mubr.bf16.mxu0 %v1761_v6 }
  0xa6   : > { %895 = vmatmul.mubr.bf16.gmra.mrb[60].mxu0 %v1763_v7 }
 0x101   : > { %v1389_v24 = vpop.f32.mrb[0].mxu0 }
 0x102   : > { %v1390_v25 = vpop.f32.mrb[1].mxu0 }
 0x103   : > { %v1391_v27 = vadd.f32 %v1390_v25, %v1389_v24  ;;  %v1392_v28 = vpop.f32.mrb[2].mxu0  ;;  %v1544_v30 = vpop.f32.mrb[0].mxu1 }
 0x104   : > { %v1393_v29 = vpop.f32.mrb[3].mxu0  ;;  %v937_v33 = vpop.f32.mrb[1].mxu1 }
 0x105   : > { %v1394_v31 = vadd.f32 %v1393_v29, %v1392_v28  ;;  %v777_v32 = vadd.f32 %v1391_v27, %v2076_v26  ;;  %v1545_v34 = vpop.f32.mrb[2].mxu1 }
 0x106   : > { %v940_v37 = vpop.f32.mrb[3].mxu1 }
 0x107   : > { %v938_v35 = vadd.f32 %v937_v33, %v777_v32  ;;  %v780_v36 = vadd.f32 %v1394_v31, %v2076_v26 }
 0x109   : > { %v941_v41 = vadd.f32 %v940_v37, %v780_v36  ;;  %v1395_v42 = vpop.f32.mrb[4].mxu0  ;;  %v1064_v44 = vmax.f32 %v938_v35, 0.0 }
 0x10a   : > { %v1396_v43 = vpop.f32.mrb[5].mxu0 }
 0x10b   : > { %v1065_v45 = vmax.f32 %v941_v41, 0.0  ;;  %v1397_v46 = vadd.f32 %v1396_v43, %v1395_v42  ;;  %v1398_v47 = vpop.f32.mrb[6].mxu0  ;;  %v1548_v51 = vpop.f32.mrb[4].mxu1 }
 0x10c   : > { %v1399_v50 = vpop.f32.mrb[7].mxu0  ;;  %v953_v56 = vpop.f32.mrb[5].mxu1 }
 0x10d   : > { %v1096_v53 = vadd.f32 %v1065_v45, %v1064_v44  ;;  %v785_v54 = vadd.f32 %v1397_v46, %v2076_v26  ;;  %v1400_v55 = vadd.f32 %v1399_v50, %v1398_v47  ;;  %v1549_v57 = vpop.f32.mrb[6].mxu1 }
 0x10e   : > { %v956_v60 = vpop.f32.mrb[7].mxu1 }
 0x10f   : > { %v946_v58 = vadd.f32 %v1544_v30, %v785_v54  ;;  %v788_v59 = vadd.f32 %v1400_v55, %v2076_v26 }
 0x111   : > { %v1066_v1 = vmax.f32 %v946_v58, 0.0  ;;  %v949_v2 = vadd.f32 %v1545_v34, %v788_v59  ;;  %v1401_v3 = vpop.f32.mrb[8].mxu0 }
 0x112   : > { %v1402_v4 = vpop.f32.mrb[9].mxu0 }
 0x113   : > { %v1067_v5 = vmax.f32 %v949_v2, 0.0  ;;  %v1403_v6 = vadd.f32 %v1402_v4, %v1401_v3  ;;  %v1404_v7 = vpop.f32.mrb[10].mxu0  ;;  %v1097_v8 = vadd.f32 %v1096_v53, %v1066_v1  ;;  %v1552_v10 = vpop.f32.mrb[8].mxu1 }
 0x114   : > { %v1405_v9 = vpop.f32.mrb[11].mxu0  ;;  %v969_v14 = vpop.f32.mrb[9].mxu1 }
 0x115   : > { %v1406_v11 = vadd.f32 %v1405_v9, %v1404_v7  ;;  %v793_v12 = vadd.f32 %v1403_v6, %v2076_v26  ;;  %v1098_v13 = vadd.f32 %v1097_v8, %v1067_v5  ;;  %v1553_v15 = vpop.f32.mrb[10].mxu1 }
 0x116   : > { %v972_v18 = vpop.f32.mrb[11].mxu1 }
 0x117   : > { %v954_v16 = vadd.f32 %v953_v56, %v793_v12  ;;  %v796_v17 = vadd.f32 %v1406_v11, %v2076_v26 }
 0x119   : > { %v1068_v19 = vmax.f32 %v954_v16, 0.0  ;;  %v957_v20 = vadd.f32 %v956_v60, %v796_v17  ;;  %v1407_v21 = vpop.f32.mrb[12].mxu0 }
 0x11a   : > { %v1408_v22 = vpop.f32.mrb[13].mxu0 }
 0x11b   : > { %v1099_v23 = vadd.f32 %v1098_v13, %v1068_v19  ;;  %v1069_v24 = vmax.f32 %v957_v20, 0.0  ;;  %v1409_v25 = vadd.f32 %v1408_v22, %v1407_v21  ;;  %v1410_v27 = vpop.f32.mrb[14].mxu0  ;;  %v2104_v29 = vpop.f32.mrb[12].mxu1 }
 0x11c   : > { %v1411_v28 = vpop.f32.mrb[15].mxu0  ;;  %v985_v33 = vpop.f32.mrb[13].mxu1 }
 0x11d   : > { %v1100_v30 = vadd.f32 %v1099_v23, %v1069_v24  ;;  %v801_v31 = vadd.f32 %v1409_v25, %v2076_v26  ;;  %v1412_v32 = vadd.f32 %v1411_v28, %v1410_v27  ;;  %v2107_v34 = vpop.f32.mrb[14].mxu1 }
 0x11e   : > { %v988_v37 = vpop.f32.mrb[15].mxu1 }
 0x11f   : > { %v962_v35 = vadd.f32 %v1548_v51, %v801_v31  ;;  %v804_v36 = vadd.f32 %v1412_v32, %v2076_v26 }
 0x121   : > { %v1070_v38 = vmax.f32 %v962_v35, 0.0  ;;  %v965_v39 = vadd.f32 %v1549_v57, %v804_v36  ;;  %v1413_v40 = vpop.f32.mrb[16].mxu0 }
 0x122   : > { %v1414_v41 = vpop.f32.mrb[17].mxu0 }
 0x123   : > { %v1071_v42 = vmax.f32 %v965_v39, 0.0  ;;  %v1415_v43 = vadd.f32 %v1414_v41, %v1413_v40  ;;  %v1416_v44 = vpop.f32.mrb[18].mxu0  ;;  %v1101_v45 = vadd.f32 %v1100_v30, %v1070_v38  ;;  %v2110_v47 = vpop.f32.mrb[16].mxu1 }
 0x124   : > { %v1417_v46 = vpop.f32.mrb[19].mxu0  ;;  %v2113_v52 = vpop.f32.mrb[17].mxu1 }
 0x125   : > { %v1418_v48 = vadd.f32 %v1417_v46, %v1416_v44  ;;  %v809_v49 = vadd.f32 %v1415_v43, %v2076_v26  ;;  %v1102_v50 = vadd.f32 %v1101_v45, %v1071_v42  ;;  %v2115_v51 = vpop.f32.mrb[18].mxu1 }
 0x126   : > { %v2118_v55 = vpop.f32.mrb[19].mxu1 }
 0x127   : > { %v970_v53 = vadd.f32 %v969_v14, %v809_v49  ;;  %v812_v54 = vadd.f32 %v1418_v48, %v2076_v26 }
 0x129   : > { %v1072_v56 = vmax.f32 %v970_v53, 0.0  ;;  %v973_v57 = vadd.f32 %v972_v18, %v812_v54  ;;  %v1419_v58 = vpop.f32.mrb[20].mxu0 }
 0x12a   : > { %v1420_v59 = vpop.f32.mrb[21].mxu0 }
 0x12b   : > { %v1103_v60 = vadd.f32 %v1102_v50, %v1072_v56  ;;  %v1073_v61 = vmax.f32 %v973_v57, 0.0  ;;  %v1421_v62 = vadd.f32 %v1420_v59, %v1419_v58  ;;  %v1422_v63 = vpop.f32.mrb[22].mxu0  ;;  %v2120_v1 = vpop.f32.mrb[20].mxu1 }
 0x12c   : > { %v1423_v0 = vpop.f32.mrb[23].mxu0  ;;  %v2123_v5 = vpop.f32.mrb[21].mxu1 }
 0x12d   : > { %v1104_v2 = vadd.f32 %v1103_v60, %v1073_v61  ;;  %v817_v3 = vadd.f32 %v1421_v62, %v2076_v26  ;;  %v1424_v4 = vadd.f32 %v1423_v0, %v1422_v63  ;;  %v2125_v6 = vpop.f32.mrb[22].mxu1 }
 0x12e   : > { %v2128_v9 = vpop.f32.mrb[23].mxu1 }
 0x12f   : > { %v978_v7 = vadd.f32 %v1552_v10, %v817_v3  ;;  %v820_v8 = vadd.f32 %v1424_v4, %v2076_v26 }
 0x131   : > { %v1074_v11 = vmax.f32 %v978_v7, 0.0  ;;  %v981_v12 = vadd.f32 %v1553_v15, %v820_v8  ;;  %v1425_v13 = vpop.f32.mrb[24].mxu0 }
 0x132   : > { %v1426_v14 = vpop.f32.mrb[25].mxu0 }
 0x133   : > { %v1075_v16 = vmax.f32 %v981_v12, 0.0  ;;  %v1427_v17 = vadd.f32 %v1426_v14, %v1425_v13  ;;  %v1428_v18 = vpop.f32.mrb[26].mxu0  ;;  %v1105_v19 = vadd.f32 %v1104_v2, %v1074_v11  ;;  %v2130_v21 = vpop.f32.mrb[24].mxu1 }
 0x134   : > { %v1429_v20 = vpop.f32.mrb[27].mxu0  ;;  %v2133_v10 = vpop.f32.mrb[25].mxu1 }
 0x135   : > { %v1430_v22 = vadd.f32 %v1429_v20, %v1428_v18  ;;  %v825_v23 = vadd.f32 %v1427_v17, %v2076_v26  ;;  %v1106_v24 = vadd.f32 %v1105_v19, %v1075_v16  ;;  %v2135_v25 = vpop.f32.mrb[26].mxu1 }
 0x136   : > { %v2138_v28 = vpop.f32.mrb[27].mxu1 }
 0x137   : > { %v986_v27 = vadd.f32 %v985_v33, %v825_v23  ;;  %v828_v15 = vadd.f32 %v1430_v22, %v2076_v26 }
 0x139   : > { %v1076_v30 = vmax.f32 %v986_v27, 0.0  ;;  %v989_v31 = vadd.f32 %v988_v37, %v828_v15  ;;  %v1431_v32 = vpop.f32.mrb[28].mxu0 }
 0x13a   : > { %v1432_v35 = vpop.f32.mrb[29].mxu0 }
 0x13b   : > { %v1107_v36 = vadd.f32 %v1106_v24, %v1076_v30  ;;  %v1077_v38 = vmax.f32 %v989_v31, 0.0  ;;  %v1433_v39 = vadd.f32 %v1432_v35, %v1431_v32  ;;  %v1434_v40 = vpop.f32.mrb[30].mxu0  ;;  %v2140_v42 = vpop.f32.mrb[28].mxu1 }
 0x13c   : > { %v1435_v41 = vpop.f32.mrb[31].mxu0  ;;  %v2143_v33 = vpop.f32.mrb[29].mxu1 }
 0x13d   : > { %v1108_v43 = vadd.f32 %v1107_v36, %v1077_v38  ;;  %v833_v44 = vadd.f32 %v1433_v39, %v2076_v26  ;;  %v1436_v45 = vadd.f32 %v1435_v41, %v1434_v40  ;;  %v2145_v46 = vpop.f32.mrb[30].mxu1 }
 0x13e   : > { %v2149_v49 = vpop.f32.mrb[31].mxu1 }
 0x13f   : > { %v994_v48 = vadd.f32 %v2104_v29, %v833_v44  ;;  %v836_v37 = vadd.f32 %v1436_v45, %v2076_v26 }
 0x141   : > { %v1078_v50 = vmax.f32 %v994_v48, 0.0  ;;  %v997_v53 = vadd.f32 %v2107_v34, %v836_v37  ;;  %v1437_v54 = vpop.f32.mrb[32].mxu0 }
 0x142   : > { %v1438_v56 = vpop.f32.mrb[33].mxu0 }
 0x143   : > { %v1079_v57 = vmax.f32 %v997_v53, 0.0  ;;  %v1439_v58 = vadd.f32 %v1438_v56, %v1437_v54  ;;  %v1440_v59 = vpop.f32.mrb[34].mxu0  ;;  %v1109_v60 = vadd.f32 %v1108_v43, %v1078_v50 }
 0x144   : > { %v1441_v61 = vpop.f32.mrb[35].mxu0 }
 0x145   : > { %v1442_v62 = vadd.f32 %v1441_v61, %v1440_v59  ;;  %v841_v63 = vadd.f32 %v1439_v58, %v2076_v26  ;;  %v1110_v0 = vadd.f32 %v1109_v60, %v1079_v57 }
 0x147   : > { %v1002_v29 = vadd.f32 %v2113_v52, %v841_v63  ;;  %v844_v2 = vadd.f32 %v1442_v62, %v2076_v26 }
 0x149   : > { %v1080_v3 = vmax.f32 %v1002_v29, 0.0  ;;  %v1005_v4 = vadd.f32 %v2118_v55, %v844_v2  ;;  %v1443_v7 = vpop.f32.mrb[36].mxu0 }
 0x14a   : > { %v1444_v34 = vpop.f32.mrb[37].mxu0 }
 0x14b   : > { %v1111_v8 = vadd.f32 %v1110_v0, %v1080_v3  ;;  %v1081_v11 = vmax.f32 %v1005_v4, 0.0  ;;  %v1445_v12 = vadd.f32 %v1444_v34, %v1443_v7  ;;  %v1446_v13 = vpop.f32.mrb[38].mxu0 }
 0x14c   : > { %v1447_v14 = vpop.f32.mrb[39].mxu0 }
 0x14d   : > { %v1112_v16 = vadd.f32 %v1111_v8, %v1081_v11  ;;  %v849_v17 = vadd.f32 %v1445_v12, %v2076_v26  ;;  %v1448_v18 = vadd.f32 %v1447_v14, %v1446_v13 }
 0x14f   : > { %v1010_v19 = vadd.f32 %v2110_v47, %v849_v17  ;;  %v852_v52 = vadd.f32 %v1448_v18, %v2076_v26 }
 0x151   : > { %v1082_v20 = vmax.f32 %v1010_v19, 0.0  ;;  %v1013_v22 = vadd.f32 %v2115_v51, %v852_v52  ;;  %v1449_v23 = vpop.f32.mrb[40].mxu0 }
 0x152   : > { %v1450_v55 = vpop.f32.mrb[41].mxu0 }
 0x153   : > { %v1083_v24 = vmax.f32 %v1013_v22, 0.0  ;;  %v1451_v27 = vadd.f32 %v1450_v55, %v1449_v23  ;;  %v1452_v15 = vpop.f32.mrb[42].mxu0  ;;  %v1113_v30 = vadd.f32 %v1112_v16, %v1082_v20 }
 0x154   : > { %v1453_v31 = vpop.f32.mrb[43].mxu0 }
 0x155   : > { %v1454_v32 = vadd.f32 %v1453_v31, %v1452_v15  ;;  %v857_v35 = vadd.f32 %v1451_v27, %v2076_v26  ;;  %v1114_v36 = vadd.f32 %v1113_v30, %v1083_v24 }
 0x157   : > { %v1018_v38 = vadd.f32 %v2123_v5, %v857_v35  ;;  %v860_v47 = vadd.f32 %v1454_v32, %v2076_v26 }
 0x159   : > { %v1084_v39 = vmax.f32 %v1018_v38, 0.0  ;;  %v1021_v40 = vadd.f32 %v2128_v9, %v860_v47  ;;  %v1455_v41 = vpop.f32.mrb[44].mxu0 }
 0x15a   : > { %v1456_v51 = vpop.f32.mrb[45].mxu0 }
 0x15b   : > { %v1115_v43 = vadd.f32 %v1114_v36, %v1084_v39  ;;  %v1085_v44 = vmax.f32 %v1021_v40, 0.0  ;;  %v1457_v45 = vadd.f32 %v1456_v51, %v1455_v41  ;;  %v1458_v48 = vpop.f32.mrb[46].mxu0 }
 0x15c   : > { %v1459_v37 = vpop.f32.mrb[47].mxu0 }
 0x15d   : > { %v1116_v50 = vadd.f32 %v1115_v43, %v1085_v44  ;;  %v865_v53 = vadd.f32 %v1457_v45, %v2076_v26  ;;  %v1460_v54 = vadd.f32 %v1459_v37, %v1458_v48 }
 0x15f   : > { %v1026_v56 = vadd.f32 %v2120_v1, %v865_v53  ;;  %v868_v5 = vadd.f32 %v1460_v54, %v2076_v26 }
 0x161   : > { %v1086_v57 = vmax.f32 %v1026_v56, 0.0  ;;  %v1029_v58 = vadd.f32 %v2125_v6, %v868_v5  ;;  %v1461_v59 = vpop.f32.mrb[48].mxu0 }
 0x162   : > { %v1462_v9 = vpop.f32.mrb[49].mxu0 }
 0x163   : > { %v1087_v60 = vmax.f32 %v1029_v58, 0.0  ;;  %v1463_v61 = vadd.f32 %v1462_v9, %v1461_v59  ;;  %v1464_v62 = vpop.f32.mrb[50].mxu0  ;;  %v1117_v63 = vadd.f32 %v1116_v50, %v1086_v57 }
 0x164   : > { %v1465_v0 = vpop.f32.mrb[51].mxu0 }
 0x165   : > { %v1466_v29 = vadd.f32 %v1465_v0, %v1464_v62  ;;  %v873_v2 = vadd.f32 %v1463_v61, %v2076_v26  ;;  %v1118_v3 = vadd.f32 %v1117_v63, %v1087_v60 }
 0x167   : > { %v1034_v4 = vadd.f32 %v2133_v10, %v873_v2  ;;  %v876_v1 = vadd.f32 %v1466_v29, %v2076_v26 }
 0x169   : > { %v1088_v7 = vmax.f32 %v1034_v4, 0.0  ;;  %v1037_v34 = vadd.f32 %v2138_v28, %v876_v1  ;;  %v1467_v8 = vpop.f32.mrb[52].mxu0 }
 0x16a   : > { %v1468_v6 = vpop.f32.mrb[53].mxu0 }
 0x16b   : > { %v1119_v11 = vadd.f32 %v1118_v3, %v1088_v7  ;;  %v1089_v12 = vmax.f32 %v1037_v34, 0.0  ;;  %v1469_v13 = vadd.f32 %v1468_v6, %v1467_v8  ;;  %v1470_v14 = vpop.f32.mrb[54].mxu0 }
 0x16c   : > { %v1471_v16 = vpop.f32.mrb[55].mxu0 }
 0x16d   : > { %v1120_v17 = vadd.f32 %v1119_v11, %v1089_v12  ;;  %v881_v18 = vadd.f32 %v1469_v13, %v2076_v26  ;;  %v1472_v19 = vadd.f32 %v1471_v16, %v1470_v14 }
 0x16f   : > { %v1042_v52 = vadd.f32 %v2130_v21, %v881_v18  ;;  %v884_v10 = vadd.f32 %v1472_v19, %v2076_v26 }
 0x171   : > { %v1090_v20 = vmax.f32 %v1042_v52, 0.0  ;;  %v1045_v22 = vadd.f32 %v2135_v25, %v884_v10  ;;  %v1473_v23 = vpop.f32.mrb[56].mxu0 }
 0x172   : > { %v1474_v28 = vpop.f32.mrb[57].mxu0 }
 0x173   : > { %v1091_v55 = vmax.f32 %v1045_v22, 0.0  ;;  %v1475_v24 = vadd.f32 %v1474_v28, %v1473_v23  ;;  %v1476_v27 = vpop.f32.mrb[58].mxu0  ;;  %v1121_v15 = vadd.f32 %v1120_v17, %v1090_v20 }
 0x174   : > { %v1477_v30 = vpop.f32.mrb[59].mxu0 }
 0x175   : > { %v1478_v31 = vadd.f32 %v1477_v30, %v1476_v27  ;;  %v889_v32 = vadd.f32 %v1475_v24, %v2076_v26  ;;  %v1122_v35 = vadd.f32 %v1121_v15, %v1091_v55 }
 0x177   : > { %v1050_v36 = vadd.f32 %v2143_v33, %v889_v32  ;;  %v892_v21 = vadd.f32 %v1478_v31, %v2076_v26 }
 0x179   : > { %v1092_v38 = vmax.f32 %v1050_v36, 0.0  ;;  %v1053_v47 = vadd.f32 %v2149_v49, %v892_v21  ;;  %v1479_v39 = vpop.f32.mrb[60].mxu0 }
 0x17a   : > { %v1480_v25 = vpop.f32.mrb[61].mxu0 }
 0x17b   : > { %v1123_v40 = vadd.f32 %v1122_v35, %v1092_v38  ;;  %v1093_v41 = vmax.f32 %v1053_v47, 0.0  ;;  %v1481_v51 = vadd.f32 %v1480_v25, %v1479_v39  ;;  %v1482_v43 = vpop.f32.mrb[62].mxu0 }
 0x17c   : > { %v1483_v44 = vpop.f32.mrb[63].mxu0 }
 0x17d   : > { %v1124_v45 = vadd.f32 %v1123_v40, %v1093_v41  ;;  %v897_v48 = vadd.f32 %v1481_v51, %v2076_v26  ;;  %v1484_v37 = vadd.f32 %v1483_v44, %v1482_v43 }
 0x17f   : > { %v1058_v50 = vadd.f32 %v2140_v42, %v897_v48  ;;  %v900_v33 = vadd.f32 %v1484_v37, %v2076_v26  ;;  %v1151_v26 = vld [vmem:[%s2238_s4] sm:$0x1] }
 0x181   : > { %v1094_v53 = vmax.f32 %v1058_v50, 0.0  ;;  %v1061_v49 = vadd.f32 %v2145_v46, %v900_v33 }
 0x183   : > { %v1125_v54 = vadd.f32 %v1124_v45, %v1094_v53  ;;  %v1095_v56 = vmax.f32 %v1061_v49, 0.0 }
 0x185   : > { %v1126_v5 = vadd.f32 %v1125_v54, %v1095_v56 }
 0x187   : > { %v1127_v57 = vrot.slane %v1126_v5, 4 }
 0x189   : > { %v1128_v58 = vadd.f32 %v1127_v57, %v1126_v5 }
 0x18b   : > { %v1129_v59 = vrot.slane %v1128_v58, 2 }
 0x18d   : > { %v1130_v9 = vadd.f32 %v1129_v59, %v1128_v58 }
 0x18f   : > { %v1131_v60 = vrot.slane %v1130_v9, 1 }
 0x191   : > { %v1132_v61 = vadd.f32 %v1131_v60, %v1130_v9 }
 0x193   : > { %v1134_v62 = vmul.f32 0.00390625, %v1132_v61 }
 0x195   : > { %1607 = vmatmul.mubr.f32.vlgmr.msra.gmra.mrb[32].mxu1 %v1134_v62 }
 0x268   : > { %v1218_v42 = vpop.f32.mrb[32].mxu1 }
 0x269   : > { %v1219_v46 = vadd.f32 %v1218_v42, %v1151_v26  ;;  %v1608_v63 = vpop.f32.mrb[33].mxu1 }
 0x26b   : > { %1223 = vst.msk [vmem:[%s216_s16] sm:$0x1] %vm1222_vm1, %v1219_v46 }
 0x26c   : > { %1777 = shalt.err (!%p1774_p3)
}
 0x26d   : > { %s1778_s9 = scalar_lea.hbm %s2192_s26, 16  ;;  %s1782_s12 = scalar_lea.hbm %s2239_s5, 32 }
 0x26e   : > { %p1779_p4 = scmp.ne.s32.totalorder %s2192_s26, %s1778_s9  ;;  %p1783_p9 = scmp.lt.u32.totalorder %s2192_s26, %s2239_s5 }
 0x26f   : > { %p1784_p10 = scmp.lt.u32.totalorder %s1782_s12, %s1778_s9  ;;  %p1786_p12 = scmp.lt.u32.totalorder %s1778_s9, %s2192_s26 }
 0x270   : > { %p1780_p7 = pnand %p1779_p4, %p1900_p5 }
 0x271   : > { %p1785_p11 = por %p1784_p10, %p1783_p9 }
 0x272   : > { %p1781_p8 = pneg %p1780_p7 }
 0x273   : > { %p1787_p13 = por %p1786_p12, %p1785_p11 }
 0x275   : > { %p1788_p0 = pnand %p1787_p13, %p1781_p8 }
 0x277   : > { %1791 = shalt.err (!%p1788_p0)
}
 0x278   : > { %1634 = dma.vmem_to_hbm [thread:$0]  (%p1900_p5), %s2194_s17, 16, %s2192_s26, %s1225_s30  }
 0x279 PF: > { %p1640_p1 = scmp.ge.s32.totalorder %s1826_s21, 2  ;;  %s1249_s15 = sand.u32 1, %s1814_s18  }
 0x27a   : > { %s1250_s16 = scalar_lea.sflag [#allocation3], %s1249_s15 }
 0x27b   : > { %p1637_p2 = pnand %p1640_p1, %p1904_p6 }
 0x27d   : > { %1809 = dma.done.wait (!%p1637_p2), %s1250_s16, 16  }
 0x27e   : > { %1811 = vsyncadd (!%p1637_p2), %s1250_s16, 4294967280  ;;  %p15_p3 = scmp.ge.s32.totalorder %s1887_s24, 4   ;;  %s2242_s18 = smov %s1818_s19 }
 0x27f   : > { %s2243_s19 = smov %s1822_s20  ;;  %s2244_s20 = smov %s1898_s27 }
 0x280   : > { %s2245_s21 = smov %s1887_s24  ;;  %17 = sbr.rel (!%p15_p3) target bundleno = 3 (0x3), region = 75 }
 0x287   :  { %1254 = vsyncpa [#allocation3], 1 }
 0x288   :  { %1256 = vsyncpa [#allocation3 + $0x1], 1 }

</bundles_post_ra>
